<compile_context>
chip_gen: v7x
topology: tpu7x:2x2x1
jax: 0.10.0
libtpu: 0.0.40
codegen_flags: <defaults>
</compile_context>

<pallas_src>
import functools

import jax
import jax.numpy as jnp
from jax import lax
from jax.experimental import pallas as pl
from jax.experimental.pallas import tpu as pltpu


def _round_up(x, m):
    return (x + m - 1) // m * m


def _distil_loss_kernel(student_ref, teacher_ref, target_ref, out_ref,
                        soft_acc, hard_acc, *,
                        soft_loss_type, T, alpha, B, C, TB, nb_inner):
    p = pl.program_id(0)          # parallel (outer) axis
    i = pl.program_id(1)          # reduction (inner) axis over batch tiles
    block_idx = p * nb_inner + i  # global batch-tile index

    @pl.when(i == 0)
    def _init():
        soft_acc[...] = jnp.zeros_like(soft_acc)
        hard_acc[...] = jnp.zeros_like(hard_acc)

    s = student_ref[...].astype(jnp.float32)   # [TB, C]
    t = teacher_ref[...].astype(jnp.float32)   # [TB, C]

    # Mask rows that fall past B (remainder tile padding).
    row_ids = block_idx * TB + lax.broadcasted_iota(jnp.int32, (TB, 1), 0)
    valid = row_ids < B                        # [TB, 1] bool

    # Row max of student logits: shared by the hard-CE LSE and the soft-CE
    # log_softmax (max(s / T) == max(s) / T since T >= 1).
    m = jnp.max(s, axis=1, keepdims=True)      # [TB, 1]
    shifted = s - m                            # [TB, C]

    # ----- soft loss (per-row contributions) -----
    if soft_loss_type == "mse":
        diff = s - t
        row_soft = jnp.sum(diff * diff, axis=1, keepdims=True)        # [TB, 1]
    elif soft_loss_type == "ce":
        inv_T = jnp.float32(1.0 / T)
        s_shift_T = shifted * inv_T                                   # (s - max)/T
        s_lse_T = jnp.log(jnp.sum(jnp.exp(s_shift_T), axis=1, keepdims=True))
        log_q = s_shift_T - s_lse_T                                   # log_softmax(s/T)
        t_shift_T = (t - jnp.max(t, axis=1, keepdims=True)) * inv_T
        t_exp = jnp.exp(t_shift_T)
        t_sum = jnp.sum(t_exp, axis=1, keepdims=True)
        p_t = t_exp / t_sum                                           # softmax(t/T)
        log_p = t_shift_T - jnp.log(t_sum)
        row_soft = jnp.sum(p_t * (log_p - log_q), axis=1, keepdims=True)
    else:
        raise ValueError(f"unknown soft_loss_type: {soft_loss_type}")

    # ----- hard loss: cross_entropy(student_logits, hard_targets), per row -----
    lse = jnp.log(jnp.sum(jnp.exp(shifted), axis=1, keepdims=True)) + m   # [TB, 1]
    col = lax.broadcasted_iota(jnp.int32, (TB, C), 1)                     # [TB, C]
    picked = jnp.sum(jnp.where(col == target_ref[...], s, 0.0),
                     axis=1, keepdims=True)                               # [TB, 1]
    row_hard = lse - picked

    # Accumulate masked per-row sums into (1, 1) scratch.
    soft_acc[...] += jnp.sum(jnp.where(valid, row_soft, 0.0),
                             axis=0, keepdims=True)
    hard_acc[...] += jnp.sum(jnp.where(valid, row_hard, 0.0),
                             axis=0, keepdims=True)

    @pl.when(i == nb_inner - 1)
    def _finalize():
        soft_norm = 1.0 / float(B * C) if soft_loss_type == "mse" else 1.0 / float(B)
        blend = (((1.0 - alpha) * soft_norm) * soft_acc[...]
                 + (alpha / float(B)) * hard_acc[...])                # (1, 1)
        # Each parallel block writes its blended partial into a dense (8,128)
        # slab (keeps the store lane-dense / tiling-legal); wrapper sums [::8, 0].
        out_ref[...] = jnp.broadcast_to(blend, out_ref.shape)


def response_based_distil_loss(student_logits, teacher_logits, hard_targets,
                               *, soft_loss_type="mse", T=10, alpha=0.1,
                               vmem_input_budget_bytes=20 * 1024 * 1024):
    assert student_logits.ndim == 2 and teacher_logits.ndim == 2
    assert student_logits.shape == teacher_logits.shape
    assert hard_targets.ndim == 1 and hard_targets.shape[0] == student_logits.shape[0]
    if soft_loss_type not in ("mse", "ce"):
        raise ValueError(f"unknown soft_loss_type: {soft_loss_type}")

    B, C = student_logits.shape
    # Keep the native dtype on the DMA path (bf16 stays bf16); widen in-kernel.
    itemsize = jnp.dtype(student_logits.dtype).itemsize

    # Batch tile: as large as the double-buffered input budget allows
    # (2 inputs x 2 buffers x TB x C x itemsize <= budget), (8,128)-aligned.
    tb = vmem_input_budget_bytes // (4 * C * itemsize)
    tb = max(8, min(2048, (tb // 8) * 8))
    tb = min(tb, _round_up(B, 8))
    nb = pl.cdiv(B, tb)

    # Outer parallel axis so v7x's second TensorCore shares the work.
    n_par = 2 if (nb >= 2 and nb % 2 == 0) else 1
    nb_inner = nb // n_par

    targets = hard_targets.astype(jnp.int32).reshape(B, 1)

    kernel = functools.partial(
        _distil_loss_kernel,
        soft_loss_type=soft_loss_type, T=float(T), alpha=float(alpha),
        B=B, C=C, TB=tb, nb_inner=nb_inner)

    flops_per_elem = 8 if soft_loss_type == "ce" else 5
    n_transcendental = (3 if soft_loss_type == "ce" else 1) * B * C
    cost = pl.CostEstimate(
        flops=flops_per_elem * B * C,
        transcendentals=n_transcendental,
        bytes_accessed=2 * B * C * itemsize + B * 4 + n_par * 8 * 128 * 4)

    out = pl.pallas_call(
        kernel,
        out_shape=jax.ShapeDtypeStruct((n_par * 8, 128), jnp.float32),
        grid_spec=pltpu.PrefetchScalarGridSpec(
            num_scalar_prefetch=0,
            grid=(n_par, nb_inner),
            in_specs=[
                pl.BlockSpec((tb, C), lambda p, i: (p * nb_inner + i, 0)),
                pl.BlockSpec((tb, C), lambda p, i: (p * nb_inner + i, 0)),
                pl.BlockSpec((tb, 1), lambda p, i: (p * nb_inner + i, 0)),
            ],
            out_specs=pl.BlockSpec((8, 128), lambda p, i: (p, 0)),
            scratch_shapes=[pltpu.VMEM((1, 1), jnp.float32),   # soft partial sum
                            pltpu.VMEM((1, 1), jnp.float32)],  # hard partial sum
        ),
        compiler_params=pltpu.CompilerParams(
            dimension_semantics=("parallel", "arbitrary"),
            vmem_limit_bytes=32 * 1024 * 1024),
        cost_estimate=cost,
    )(student_logits, teacher_logits, targets)

    # Sum the per-parallel-block blended partials (element [0,0] of each slab).
    return jnp.sum(out[::8, 0])


def _reference(student, teacher, targets, *, soft_loss_type, T, alpha):
    # Pure-JAX reference mirroring the PyTorch module (for validation only).
    B, C = student.shape
    if soft_loss_type == "mse":
        soft = jnp.mean((student - teacher) ** 2)
    else:
        log_q = jax.nn.log_softmax(student / T, axis=1)
        p = jax.nn.softmax(teacher / T, axis=1)
        soft = jnp.sum(p * (jnp.log(p) - log_q)) / B
    log_probs = jax.nn.log_softmax(student, axis=1)
    hard = -jnp.mean(log_probs[jnp.arange(B), targets])
    return (1.0 - alpha) * soft + alpha * hard


if __name__ == "__main__":
    B, C = 8, 32  # batch, num_classes
    key = jax.random.PRNGKey(0)
    k1, k2, k3 = jax.random.split(key, 3)
    student = jax.random.normal(k1, (B, C), dtype=jnp.float32)
    teacher = jax.random.normal(k2, (B, C), dtype=jnp.float32)
    targets = jax.random.randint(k3, (B,), 0, C, dtype=jnp.int32)

    ok = True
    # f32 inputs, both soft-loss modes.
    for soft_type in ("mse", "ce"):
        got = jax.block_until_ready(response_based_distil_loss(
            student, teacher, targets, soft_loss_type=soft_type, T=10, alpha=0.1))
        want = _reference(student, teacher, targets,
                          soft_loss_type=soft_type, T=10.0, alpha=0.1)
        ok = ok and bool(jnp.allclose(got, want, rtol=1e-5, atol=1e-5))

    # bf16 inputs stay bf16 on the DMA path; kernel widens to f32 on-chip.
    s16 = student.astype(jnp.bfloat16)
    t16 = teacher.astype(jnp.bfloat16)
    got16 = jax.block_until_ready(response_based_distil_loss(
        s16, t16, targets, soft_loss_type="ce", T=10, alpha=0.1))
    want16 = _reference(s16.astype(jnp.float32), t16.astype(jnp.float32),
                        targets, soft_loss_type="ce", T=10.0, alpha=0.1)
    ok = ok and bool(jnp.allclose(got16, want16, rtol=5e-3, atol=5e-3))

    if ok:
        print("KERNEL_OK")
</pallas_src>

<mosaic_0001>
module attributes {stable_mosaic.version = 11 : i64} {
  func.func @_distil_loss_kernel(%arg0: i32, %arg1: i32, %arg2: memref<8x32xf32, #tpu.memory_space<vmem>>, %arg3: memref<8x32xf32, #tpu.memory_space<vmem>>, %arg4: memref<8x1xi32, #tpu.memory_space<vmem>>, %arg5: memref<8x128xf32, #tpu.memory_space<vmem>>, %arg6: memref<1x1xf32, #tpu.memory_space<vmem>>, %arg7: memref<1x1xf32, #tpu.memory_space<vmem>>) attributes {dimension_semantics = [#tpu.dimension_semantics<parallel>, #tpu.dimension_semantics<arbitrary>], iteration_bounds = array<i64: 1, 1>, scalar_prefetch = 0 : i64, scratch_operands = 2 : i64, tpu.core_type = #tpu.core_type<tc>, window_params = [{transform_indices = @transform_0, window_bounds = array<i64: 8, 32>}, {transform_indices = @transform_1, window_bounds = array<i64: 8, 32>}, {transform_indices = @transform_2, window_bounds = array<i64: 8, 1>}, {transform_indices = @transform_3, window_bounds = array<i64: 8, 128>}]} {
    %c1_i32 = arith.constant 1 : i32
    %0 = arith.muli %arg0, %c1_i32 : i32
    %1 = arith.addi %0, %arg1 : i32
    %c0_i32 = arith.constant 0 : i32
    %2 = arith.cmpi eq, %arg1, %c0_i32 : i32
    %3 = arith.extui %2 : i1 to i32
    %c0_i32_0 = arith.constant 0 : i32
    %4 = arith.cmpi ne, %3, %c0_i32_0 : i32
    scf.if %4 {
      %cst_25 = arith.constant 0.000000e+00 : f32
      %52 = vector.broadcast %cst_25 : f32 to vector<1x1xf32>
      %c0_26 = arith.constant 0 : index
      %c0_27 = arith.constant 0 : index
      %53 = vector.load %arg6[%c0_26, %c0_27] : memref<1x1xf32, #tpu.memory_space<vmem>>, vector<1x1xf32>
      tpu.vector_store %arg6[%c0_26, %c0_27], %52 {strides = array<i32>} : memref<1x1xf32, #tpu.memory_space<vmem>>, vector<1x1xf32>,
      %cst_28 = arith.constant 0.000000e+00 : f32
      %54 = vector.broadcast %cst_28 : f32 to vector<1x1xf32>
      %c0_29 = arith.constant 0 : index
      %c0_30 = arith.constant 0 : index
      %55 = vector.load %arg7[%c0_29, %c0_30] : memref<1x1xf32, #tpu.memory_space<vmem>>, vector<1x1xf32>
      tpu.vector_store %arg7[%c0_29, %c0_30], %54 {strides = array<i32>} : memref<1x1xf32, #tpu.memory_space<vmem>>, vector<1x1xf32>,
    } else {
    }
    %c0 = arith.constant 0 : index
    %c0_1 = arith.constant 0 : index
    %5 = vector.load %arg2[%c0, %c0_1] : memref<8x32xf32, #tpu.memory_space<vmem>>, vector<8x32xf32>
    %c0_2 = arith.constant 0 : index
    %c0_3 = arith.constant 0 : index
    %6 = vector.load %arg3[%c0_2, %c0_3] : memref<8x32xf32, #tpu.memory_space<vmem>>, vector<8x32xf32>
    %c8_i32 = arith.constant 8 : i32
    %7 = arith.muli %1, %c8_i32 : i32
    %8 = tpu.iota {dimensions = array<i32: 0>} : vector<8x1xi32>
    %9 = vector.broadcast %7 : i32 to vector<8x1xi32>
    %10 = arith.addi %9, %8 : vector<8x1xi32>
    %c8_i32_4 = arith.constant 8 : i32
    %11 = vector.broadcast %c8_i32_4 : i32 to vector<8x1xi32>
    %12 = arith.cmpi slt, %10, %11 : vector<8x1xi32>
    %cst = arith.constant dense<0xFF800000> : vector<8xf32>
    %13 = vector.multi_reduction <maximumf>, %5, %cst [1] : vector<8x32xf32> to vector<8xf32>
    %14 = vector.shape_cast %13 : vector<8xf32> to vector<8x1xf32>
    %15 = vector.broadcast %14 : vector<8x1xf32> to vector<8x32xf32>
    %16 = arith.subf %5, %15 : vector<8x32xf32>
    %17 = arith.subf %5, %6 : vector<8x32xf32>
    %18 = arith.mulf %17, %17 : vector<8x32xf32>
    %cst_5 = arith.constant dense<0.000000e+00> : vector<8xf32>
    %19 = vector.multi_reduction <add>, %18, %cst_5 [1] : vector<8x32xf32> to vector<8xf32>
    %20 = vector.shape_cast %19 : vector<8xf32> to vector<8x1xf32>
    %21 = math.exp %16 : vector<8x32xf32>
    %cst_6 = arith.constant dense<0.000000e+00> : vector<8xf32>
    %22 = vector.multi_reduction <add>, %21, %cst_6 [1] : vector<8x32xf32> to vector<8xf32>
    %23 = vector.shape_cast %22 : vector<8xf32> to vector<8x1xf32>
    %24 = math.log %23 : vector<8x1xf32>
    %25 = arith.addf %24, %14 : vector<8x1xf32>
    %26 = tpu.iota {dimensions = array<i32: 1>} : vector<8x32xi32>
    %c0_7 = arith.constant 0 : index
    %c0_8 = arith.constant 0 : index
    %27 = vector.load %arg4[%c0_7, %c0_8] : memref<8x1xi32, #tpu.memory_space<vmem>>, vector<8x1xi32>
    %28 = vector.broadcast %27 : vector<8x1xi32> to vector<8x32xi32>
    %29 = arith.cmpi eq, %26, %28 : vector<8x32xi32>
    %cst_9 = arith.constant 0.000000e+00 : f32
    %30 = vector.broadcast %cst_9 : f32 to vector<8x32xf32>
    %31 = arith.select %29, %5, %30 : vector<8x32xi1>, vector<8x32xf32>
    %cst_10 = arith.constant dense<0.000000e+00> : vector<8xf32>
    %32 = vector.multi_reduction <add>, %31, %cst_10 [1] : vector<8x32xf32> to vector<8xf32>
    %33 = vector.shape_cast %32 : vector<8xf32> to vector<8x1xf32>
    %34 = arith.subf %25, %33 : vector<8x1xf32>
    %c0_11 = arith.constant 0 : index
    %c0_12 = arith.constant 0 : index
    %35 = vector.load %arg6[%c0_11, %c0_12] : memref<1x1xf32, #tpu.memory_space<vmem>>, vector<1x1xf32>
    %cst_13 = arith.constant 0.000000e+00 : f32
    %36 = vector.broadcast %cst_13 : f32 to vector<8x1xf32>
    %37 = arith.select %12, %20, %36 : vector<8x1xi1>, vector<8x1xf32>
    %cst_14 = arith.constant dense<0.000000e+00> : vector<1xf32>
    %38 = vector.multi_reduction <add>, %37, %cst_14 [0] : vector<8x1xf32> to vector<1xf32>
    %39 = vector.shape_cast %38 : vector<1xf32> to vector<1x1xf32>
    %40 = arith.addf %35, %39 : vector<1x1xf32>
    %c0_15 = arith.constant 0 : index
    %c0_16 = arith.constant 0 : index
    %41 = vector.load %arg6[%c0_15, %c0_16] : memref<1x1xf32, #tpu.memory_space<vmem>>, vector<1x1xf32>
    tpu.vector_store %arg6[%c0_15, %c0_16], %40 {strides = array<i32>} : memref<1x1xf32, #tpu.memory_space<vmem>>, vector<1x1xf32>,
    %c0_17 = arith.constant 0 : index
    %c0_18 = arith.constant 0 : index
    %42 = vector.load %arg7[%c0_17, %c0_18] : memref<1x1xf32, #tpu.memory_space<vmem>>, vector<1x1xf32>
    %cst_19 = arith.constant 0.000000e+00 : f32
    %43 = vector.broadcast %cst_19 : f32 to vector<8x1xf32>
    %44 = arith.select %12, %34, %43 : vector<8x1xi1>, vector<8x1xf32>
    %cst_20 = arith.constant dense<0.000000e+00> : vector<1xf32>
    %45 = vector.multi_reduction <add>, %44, %cst_20 [0] : vector<8x1xf32> to vector<1xf32>
    %46 = vector.shape_cast %45 : vector<1xf32> to vector<1x1xf32>
    %47 = arith.addf %42, %46 : vector<1x1xf32>
    %c0_21 = arith.constant 0 : index
    %c0_22 = arith.constant 0 : index
    %48 = vector.load %arg7[%c0_21, %c0_22] : memref<1x1xf32, #tpu.memory_space<vmem>>, vector<1x1xf32>
    tpu.vector_store %arg7[%c0_21, %c0_22], %47 {strides = array<i32>} : memref<1x1xf32, #tpu.memory_space<vmem>>, vector<1x1xf32>,
    %c0_i32_23 = arith.constant 0 : i32
    %49 = arith.cmpi eq, %arg1, %c0_i32_23 : i32
    %50 = arith.extui %49 : i1 to i32
    %c0_i32_24 = arith.constant 0 : i32
    %51 = arith.cmpi ne, %50, %c0_i32_24 : i32
    scf.if %51 {
      %c0_25 = arith.constant 0 : index
      %c0_26 = arith.constant 0 : index
      %52 = vector.load %arg6[%c0_25, %c0_26] : memref<1x1xf32, #tpu.memory_space<vmem>>, vector<1x1xf32>
      %cst_27 = arith.constant 0.00351562491 : f32
      %53 = vector.broadcast %cst_27 : f32 to vector<1x1xf32>
      %54 = arith.mulf %53, %52 : vector<1x1xf32>
      %c0_28 = arith.constant 0 : index
      %c0_29 = arith.constant 0 : index
      %55 = vector.load %arg7[%c0_28, %c0_29] : memref<1x1xf32, #tpu.memory_space<vmem>>, vector<1x1xf32>
      %cst_30 = arith.constant 1.250000e-02 : f32
      %56 = vector.broadcast %cst_30 : f32 to vector<1x1xf32>
      %57 = arith.mulf %56, %55 : vector<1x1xf32>
      %58 = arith.addf %54, %57 : vector<1x1xf32>
      %59 = vector.shape_cast %58 : vector<1x1xf32> to vector<1x1xf32>
      %60 = vector.broadcast %59 : vector<1x1xf32> to vector<8x128xf32>
      %c0_31 = arith.constant 0 : index
      %c0_32 = arith.constant 0 : index
      %61 = vector.load %arg5[%c0_31, %c0_32] : memref<8x128xf32, #tpu.memory_space<vmem>>, vector<8x128xf32>
      tpu.vector_store %arg5[%c0_31, %c0_32], %60 {strides = array<i32>} : memref<8x128xf32, #tpu.memory_space<vmem>>, vector<8x128xf32>,
    } else {
    }
    return
  }
  func.func @transform_0(%arg0: i32, %arg1: i32) -> (i32, i32) {
    %c1_i32 = arith.constant 1 : i32
    %0 = arith.muli %arg0, %c1_i32 : i32
    %1 = arith.addi %0, %arg1 : i32
    %c0_i32 = arith.constant 0 : i32
    %c0_i32_0 = arith.constant 0 : i32
    return %1, %c0_i32 : i32, i32
  }
  func.func @transform_1(%arg0: i32, %arg1: i32) -> (i32, i32) {
    %c1_i32 = arith.constant 1 : i32
    %0 = arith.muli %arg0, %c1_i32 : i32
    %1 = arith.addi %0, %arg1 : i32
    %c0_i32 = arith.constant 0 : i32
    %c0_i32_0 = arith.constant 0 : i32
    return %1, %c0_i32 : i32, i32
  }
  func.func @transform_2(%arg0: i32, %arg1: i32) -> (i32, i32) {
    %c1_i32 = arith.constant 1 : i32
    %0 = arith.muli %arg0, %c1_i32 : i32
    %1 = arith.addi %0, %arg1 : i32
    %c0_i32 = arith.constant 0 : i32
    %c0_i32_0 = arith.constant 0 : i32
    return %1, %c0_i32 : i32, i32
  }
  func.func @transform_3(%arg0: i32, %arg1: i32) -> (i32, i32) {
    %c0_i32 = arith.constant 0 : i32
    %c0_i32_0 = arith.constant 0 : i32
    return %arg0, %c0_i32 : i32, i32
  }
}

</mosaic_0001>

<bundles_post_ra>
// kernel: tpu_custom_call.1
= control target key start
LH: loop header
LB: loop body
LE: loop exit
PB: predicated region body
PF: predicated region fallthrough
CT: control target
= control target key end

     0   :  { %8 = vsyncpa [#allocation5], 0  ;;  %s297_s0 = inlined_call_operand.vmem [shape: f32[8,32], index: 0, kind: input, shape index: {}]   ;;  %s298_s1 = inlined_call_operand.hbm [shape: f32[8,32], index: 1, kind: input, shape index: {}]   ;;  %s299_s2 = inlined_call_operand.vmem [shape: s32[8,1], index: 2, kind: input, shape index: {}]   ;;  %s300_s3 = inlined_call_operand.hbm [shape: f32[8,128], index: 3, kind: output, shape index: {}]  }
   0x1   :  { %9 = vsyncpa [#allocation6], 0  ;;  %s235_s12 = smov [#allocation4]   ;;  %s187_s16 = scalar_lea.hbm %s298_s1, 128 }
   0x2   :  { %s27_s13 = sshll.u32 %s235_s12, 4  ;;  %p188_p0 = scmp.ne.s32.totalorder %s298_s1, %s187_s16  ;;  %s28_s13 = int_to_ptr.vmem [resolvable:$true] %s27_s13 }
   0x3   :  { %p191_p1 = scmp.lt.u32.totalorder %s187_s16, %s298_s1 }
   0x5   :  { %p193_p2 = pnand %p191_p1, %p188_p0 }
   0x7   :  { %196 = shalt.err (!%p193_p2)
}
   0x8   :  { %s197_s21 = scalar_lea.vmem %s28_s13, 128  ;;  %p202_p4 = scmp.lt.s32.totalorder %s28_s13, %s28_s13 }
   0x9   :  { %p198_p3 = scmp.ne.s32.totalorder %s28_s13, %s197_s21  ;;  %p203_p5 = scmp.lt.s32.totalorder %s197_s21, %s197_s21 }
   0xb   :  { %p204_p6 = por %p203_p5, %p202_p4 }
   0xd   :  { %p205_p7 = pnand %p204_p6, %p198_p3 }
   0xf   :  { %208 = shalt.err (!%p205_p7)
}
  0x10   :  { %30 = dma.hbm_to_vmem [thread:$0]  %s298_s1, 128, %s28_s13, [#allocation5]  }
  0x11   :  { %231 = dma.done.wait [#allocation5], 128  }
  0x12   :  { %232 = vsyncadd [#allocation5], 4294967168  ;;  %v236_v0 = vmov 0   ;;  %vm81_vm0 = vcmask 261120   ;;  %v73_v1 = vld [vmem:[%s297_s0] sm:$0xff]  ;;  %v99_v7 = vlaneseq  ;;  %vm70_vm2 = vcmask 0  }
  0x13   :  { %181 = vset.pattern.permute.xlu0 %v236_v0  ;;  %182 = vset.pattern.permute.xlu1 %v236_v0  ;;  %v82_v2 = vsel %vm81_vm0, %v73_v1, -inf  ;;  %v101_v3 = vld [vmem:[%s299_s2] sm:$0xff]  ;;  %v237_v18 = vmov 0.0   ;;  %s238_s0 = smov [#allocation7]  }
  0x14   :  { %83 = vmax.xlane.f32.xlu0 %v82_v2  ;;  %v100_v8 = vand.u32 127, %v99_v7  ;;  %v74_v10 = vld [vmem:[#allocation4] sm:$0xff]  ;;  %72 = vst.msk [vmem:[#allocation3] sm:$0x1] %vm70_vm2, %v237_v18  ;;  %71 = vst.msk [vmem:[#allocation2] sm:$0x1] %vm70_vm2, %v237_v18 }
  0x15   :  { %v86_v11 = vsub.f32 %v73_v1, %v74_v10  ;;  %v142_v42 = vshrl.u32 %v99_v7, 7  ;;  %s156_s1 = sshll.u32 %s238_s0, 4  ;;  %s157_s1 = int_to_ptr.vmem [resolvable:$true] %s156_s1 }
  0x16   :  { %s209_s2 = scalar_lea.vmem %s157_s1, 128  ;;  %p214_p9 = scmp.lt.s32.totalorder %s157_s1, %s157_s1 }
  0x17   :  { %v87_v16 = vmul.f32 %v86_v11, %v86_v11  ;;  %v143_v47 = vsub.s32 0, %v142_v42  ;;  %p210_p8 = scmp.ne.s32.totalorder %s157_s1, %s209_s2  ;;  %p215_p10 = scmp.lt.s32.totalorder %s209_s2, %s209_s2 }
  0x19   :  { %v88_v17 = vsel %vm81_vm0, %v87_v16, 0.0  ;;  %p216_p11 = por %p215_p10, %p214_p9 }
  0x1b   :  { %v111_v32 = vld [vmem:[#allocation2] sm:$0x1]  ;;  %v122_v39 = vld [vmem:[#allocation3] sm:$0x1]  ;;  %p217_p12 = pnand %p216_p11, %p210_p8 }
  0x2a   :  { %103 = vperm.xlu0 %181, %v101_v3  }
  0xa1   :  { %v84_v4 = vpop.xlane.xlu0 %83 }
  0xa2   :  { %v85_v5 = vsub.f32 %v73_v1, %v84_v4 }
  0xa4   :  { %v91_v6 = vmul.f32 1.442695, %v85_v5 }
  0xa6   :  { %183 = vpow2.f32 %v91_v6 }
  0xa9   :  { %v104_v9 = vpop.permute.xlu0 %103 }
  0xaa   :  { %vm105_vm1 = vcmp.eq.s32.totalorder %v100_v8, %v104_v9 }
  0xab   :  { %v106_v13 = vsel %vm105_vm1, %v73_v1, 0.0 }
  0xac   :  { %v107_v15 = vsel %vm81_vm0, %v106_v13, 0.0 }
  0xb0   :  { %v184_v12 = vpop.eup %183 }
  0xb1   :  { %v93_v14 = vsel %vm81_vm0, %v184_v12, 0.0 }
  0xb2   :  { %94 = vadd.xlane.f32.xlu1 %v93_v14 }
  0xb6   :  { %108 = vadd.xlane.f32.xlu1 %v107_v15 }
  0xba   :  { %89 = vadd.xlane.f32.xlu1 %v88_v17 }
 0x13f   :  { %v95_v19 = vpop.xlane.xlu1 %94 }
 0x140   :  { %185 = vlog2.f32 %v95_v19 }
 0x143   :  { %v109_v20 = vpop.xlane.xlu1 %108 }
 0x147   :  { %v90_v21 = vpop.xlane.xlu1 %89 }
 0x148   :  { %v113_v22 = vrot.slane %v90_v21, 4 }
 0x14a   :  { %v186_v23 = vpop.eup %185  ;;  %v114_v24 = vadd.f32 %v113_v22, %v90_v21 }
 0x14b   :  { %v97_v25 = vmul.f32 0.6931472, %v186_v23 }
 0x14c   :  { %v115_v26 = vrot.slane %v114_v24, 2 }
 0x14d   :  { %v98_v27 = vadd.f32 %v97_v25, %v84_v4 }
 0x14e   :  { %v116_v28 = vadd.f32 %v115_v26, %v114_v24 }
 0x14f   :  { %v110_v29 = vsub.f32 %v98_v27, %v109_v20 }
 0x150   :  { %v117_v30 = vrot.slane %v116_v28, 1 }
 0x151   :  { %v124_v31 = vrot.slane %v110_v29, 4 }
 0x152   :  { %v118_v33 = vadd.f32 %v117_v30, %v116_v28 }
 0x153   :  { %v125_v34 = vadd.f32 %v124_v31, %v110_v29 }
 0x154   :  { %v119_v35 = vadd.f32 %v118_v33, %v111_v32 }
 0x155   :  { %v126_v36 = vrot.slane %v125_v34, 2 }
 0x156   :  { %121 = vst.msk [vmem:[#allocation2] sm:$0x1] %vm70_vm2, %v119_v35 }
 0x157   :  { %v127_v37 = vadd.f32 %v126_v36, %v125_v34 }
 0x159   :  { %v128_v38 = vrot.slane %v127_v37, 1 }
 0x15b   :  { %v129_v40 = vadd.f32 %v128_v38, %v127_v37 }
 0x15d   :  { %v130_v41 = vadd.f32 %v129_v40, %v122_v39  ;;  %v135_v43 = vld [vmem:[#allocation2] sm:$0x1] }
 0x15e   :  { %v136_v45 = vmul.f32 0.003515625, %v135_v43 }
 0x15f   :  { %131 = vst.msk [vmem:[#allocation3] sm:$0x1] %vm70_vm2, %v130_v41 }
 0x166   :  { %v137_v44 = vld [vmem:[#allocation3] sm:$0x1] }
 0x167   :  { %v138_v46 = vmul.f32 0.0125, %v137_v44 }
 0x169   :  { %v139_v48 = vadd.f32 %v138_v46, %v136_v45 }
 0x16b   :  { %v144_v49 = vrot.slane %v139_v48, %v143_v47 }
 0x16d   :  { %146 = vperm.xlu1 %182, %v144_v49  }
 0x1ec   :  { %v147_v50 = vpop.permute.xlu1 %146 }
 0x1ed   :  { %149 = vst [vmem:[#allocation7] sm:$0xff] %v147_v50 }
 0x1ee   :  { %220 = shalt.err (!%p217_p12)
}
 0x1ef   :  { %s221_s30 = scalar_lea.hbm %s300_s3, 128 }
 0x1f0   :  { %p222_p13 = scmp.ne.s32.totalorder %s300_s3, %s221_s30  ;;  %p225_p0 = scmp.lt.u32.totalorder %s221_s30, %s300_s3 }
 0x1f2   :  { %p227_p1 = pnand %p225_p0, %p222_p13 }
 0x1f4   :  { %230 = shalt.err (!%p227_p1)
}
 0x1f5   :  { %159 = dma.vmem_to_hbm [thread:$0]  %s157_s1, 128, %s300_s3, [#allocation6]  }
 0x1f6   :  { %233 = dma.done.wait [#allocation6], 128  }
 0x1f7   :  { %234 = vsyncadd [#allocation6], 4294967168 }
 0x1f8   :  { %163 = vsyncpa [#allocation5], 1 }
 0x1f9   :  { %164 = vsyncpa [#allocation6], 1 }

</bundles_post_ra>
